<compile_context>
chip_gen: v5e
topology: v5e:2x2
jax: 0.10.0
libtpu: 0.0.40
codegen_flags: <defaults>
</compile_context>

<pallas_src>
import functools

import jax
import jax.numpy as jnp
from jax.experimental import pallas as pl
from jax.experimental.pallas import tpu as pltpu


def vae_kernel(n_valid, tile_n,
               x_ref, wenc_ref, benc_ref, wdec_ref, bdec_ref, eps_ref,
               recon_ref, enc_ref, mse_ref, kld_ref):
    i = pl.program_id(0)
    L = eps_ref.shape[1]

    x = x_ref[...]                                        # bf16 [TN, D]

    # ---- encode: single fused matmul for (mu | logvar) on the MXU ----
    enc = jnp.dot(x, wenc_ref[...],
                  preferred_element_type=jnp.float32) + benc_ref[...]
    mu = enc[:, :L]                                       # f32 [TN, L]
    logvar = enc[:, L:]                                   # f32 [TN, L]

    # ---- reparameterize: z = mu + eps * exp(0.5 * logvar)  (f32 VPU/EUP) ----
    std = jnp.exp(0.5 * logvar)
    z = mu + eps_ref[...] * std

    # ---- decode: linear back to input dim (MXU, bf16 operands, f32 acc) ----
    recon = jnp.dot(z.astype(wdec_ref.dtype), wdec_ref[...],
                    preferred_element_type=jnp.float32) + bdec_ref[...]

    enc_ref[...] = enc
    recon_ref[...] = recon

    # ---- loss_function: per-tile partial sums (batch was zero-padded) ----
    row = jax.lax.broadcasted_iota(jnp.int32, (tile_n, 1), 0) + i * tile_n
    valid = (row < n_valid).astype(jnp.float32)           # [TN, 1]

    diff = (recon - x.astype(jnp.float32)) * valid
    mse_part = jnp.sum(diff * diff)

    kld_rows = -0.5 * jnp.sum(1.0 + logvar - mu * mu - jnp.exp(logvar),
                              axis=1, keepdims=True)      # [TN, 1]
    kld_part = jnp.sum(kld_rows * valid)

    # Dense (8,128) slab per tile keeps the store unmasked and race-free under
    # the "parallel" batch axis; the wrapper reads [tile, 0, 0].
    mse_ref[...] = jnp.full(mse_ref.shape, mse_part, dtype=jnp.float32)
    kld_ref[...] = jnp.full(kld_ref.shape, kld_part, dtype=jnp.float32)


def vae_forward(x_nchw, params, eps, *, tile_n=128):
    N, C, H, W = x_nchw.shape
    D = C * H * W
    L = params["w_enc"].shape[1] // 2

    x_flat = x_nchw.reshape(N, D).astype(jnp.bfloat16)
    eps = eps.astype(jnp.float32)

    # Batch tile: multiple of 8 sublanes, at most 128 rows per step.
    TN = min(tile_n, 8 * pl.cdiv(N, 8))
    G = pl.cdiv(N, TN)
    N_pad = G * TN
    if N_pad != N:
        x_flat = jnp.pad(x_flat, ((0, N_pad - N), (0, 0)))
        eps = jnp.pad(eps, ((0, N_pad - N), (0, 0)))

    kernel = functools.partial(vae_kernel, N, TN)

    recon, enc, mse_p, kld_p = pl.pallas_call(
        kernel,
        out_shape=(
            jax.ShapeDtypeStruct((N_pad, D), jnp.float32),      # recon (flat)
            jax.ShapeDtypeStruct((N_pad, 2 * L), jnp.float32),  # [mu | logvar]
            jax.ShapeDtypeStruct((G, 8, 128), jnp.float32),     # mse partials
            jax.ShapeDtypeStruct((G, 8, 128), jnp.float32),     # kld partials
        ),
        grid=(G,),
        in_specs=[
            pl.BlockSpec((TN, D), lambda i: (i, 0)),        # x tile
            pl.BlockSpec((D, 2 * L), lambda i: (0, 0)),     # fused enc weight
            pl.BlockSpec((1, 2 * L), lambda i: (0, 0)),     # fused enc bias
            pl.BlockSpec((L, D), lambda i: (0, 0)),         # dec weight
            pl.BlockSpec((1, D), lambda i: (0, 0)),         # dec bias
            pl.BlockSpec((TN, L), lambda i: (i, 0)),        # eps tile
        ],
        out_specs=(
            pl.BlockSpec((TN, D), lambda i: (i, 0)),
            pl.BlockSpec((TN, 2 * L), lambda i: (i, 0)),
            pl.BlockSpec((1, 8, 128), lambda i: (i, 0, 0)),
            pl.BlockSpec((1, 8, 128), lambda i: (i, 0, 0)),
        ),
        compiler_params=pltpu.CompilerParams(
            dimension_semantics=("parallel",),
            vmem_limit_bytes=32 * 1024 * 1024),
    )(x_flat, params["w_enc"], params["b_enc"],
      params["w_dec"], params["b_dec"], eps)

    mu = enc[:N, :L]
    logvar = enc[:N, L:]
    recon = recon[:N].reshape(N, C, H, W)
    mse = jnp.sum(mse_p[:, 0, 0]) / jnp.float32(N * D)
    kld = jnp.sum(kld_p[:, 0, 0]) / jnp.float32(N)
    return recon, mu, logvar, mse, kld


def init_params(key, in_dim, latent_dim):
    k = jax.random.split(key, 3)
    scale_in = 1.0 / jnp.sqrt(jnp.float32(in_dim))
    scale_lat = 1.0 / jnp.sqrt(jnp.float32(latent_dim))
    w_mu = jax.random.normal(k[0], (in_dim, latent_dim), jnp.float32) * scale_in
    w_lv = jax.random.normal(k[1], (in_dim, latent_dim), jnp.float32) * scale_in
    w_dec = jax.random.normal(k[2], (latent_dim, in_dim), jnp.float32) * scale_lat
    return {
        # fused encoder weight/bias: [D, 2L] = [w_mu | w_logvar]
        "w_enc": jnp.concatenate([w_mu, w_lv], axis=1).astype(jnp.bfloat16),
        "b_enc": jnp.zeros((1, 2 * latent_dim), jnp.float32),
        "w_dec": w_dec.astype(jnp.bfloat16),
        "b_dec": jnp.zeros((1, in_dim), jnp.float32),
    }


if __name__ == "__main__":
    key = jax.random.PRNGKey(0)
    k_x, k_p, k_eps = jax.random.split(key, 3)

    N, C, H, W = 2, 4, 16, 16
    latent_dim = 32
    D = C * H * W

    x = jax.random.normal(k_x, (N, C, H, W), jnp.float32)   # NCHW input
    params = init_params(k_p, D, latent_dim)
    eps = jax.random.normal(k_eps, (N, latent_dim), jnp.float32)

    recon, mu, logvar, mse, kld = vae_forward(x, params, eps)
    jax.block_until_ready((recon, mu, logvar, mse, kld))

    # Pure-JAX reference of the same synthetic forward (same bf16 matmul path).
    x_bf = x.reshape(N, D).astype(jnp.bfloat16)
    enc_r = jnp.dot(x_bf, params["w_enc"],
                    preferred_element_type=jnp.float32) + params["b_enc"]
    mu_r, lv_r = enc_r[:, :latent_dim], enc_r[:, latent_dim:]
    z_r = mu_r + eps * jnp.exp(0.5 * lv_r)
    rec_r = (jnp.dot(z_r.astype(jnp.bfloat16), params["w_dec"],
                     preferred_element_type=jnp.float32) + params["b_dec"])
    diff_r = rec_r - x_bf.astype(jnp.float32)
    mse_r = jnp.sum(diff_r * diff_r) / (N * D)
    kld_r = jnp.mean(-0.5 * jnp.sum(1.0 + lv_r - mu_r * mu_r - jnp.exp(lv_r),
                                    axis=1))

    assert jnp.allclose(recon, rec_r.reshape(N, C, H, W), atol=1e-2, rtol=1e-2)
    assert jnp.allclose(mu, mu_r, atol=1e-2, rtol=1e-2)
    assert jnp.allclose(logvar, lv_r, atol=1e-2, rtol=1e-2)
    assert jnp.allclose(mse, mse_r, atol=1e-2, rtol=1e-2)
    assert jnp.allclose(kld, kld_r, atol=1e-2, rtol=1e-2)

    print("KERNEL_OK")
</pallas_src>

<mosaic_0001>
module attributes {stable_mosaic.version = 11 : i64} {
  func.func @vae_kernel(%arg0: i32, %arg1: memref<8x1024xbf16, #tpu.memory_space<vmem>>, %arg2: memref<1024x64xbf16, #tpu.memory_space<vmem>>, %arg3: memref<1x64xf32, #tpu.memory_space<vmem>>, %arg4: memref<32x1024xbf16, #tpu.memory_space<vmem>>, %arg5: memref<1x1024xf32, #tpu.memory_space<vmem>>, %arg6: memref<8x32xf32, #tpu.memory_space<vmem>>, %arg7: memref<8x1024xf32, #tpu.memory_space<vmem>>, %arg8: memref<8x64xf32, #tpu.memory_space<vmem>>, %arg9: memref<1x8x128xf32, #tpu.memory_space<vmem>>, %arg10: memref<1x8x128xf32, #tpu.memory_space<vmem>>) attributes {dimension_semantics = [#tpu.dimension_semantics<parallel>], iteration_bounds = array<i64: 1>, scalar_prefetch = 0 : i64, scratch_operands = 0 : i64, tpu.core_type = #tpu.core_type<tc>, window_params = [{transform_indices = @transform_0, window_bounds = array<i64: 8, 1024>}, {pipeline_mode = #tpu.pipeline_mode<synchronous>, transform_indices = @transform_1, window_bounds = array<i64: 1024, 64>}, {pipeline_mode = #tpu.pipeline_mode<synchronous>, transform_indices = @transform_2, window_bounds = array<i64: 1, 64>}, {pipeline_mode = #tpu.pipeline_mode<synchronous>, transform_indices = @transform_3, window_bounds = array<i64: 32, 1024>}, {pipeline_mode = #tpu.pipeline_mode<synchronous>, transform_indices = @transform_4, window_bounds = array<i64: 1, 1024>}, {transform_indices = @transform_5, window_bounds = array<i64: 8, 32>}, {transform_indices = @transform_6, window_bounds = array<i64: 8, 1024>}, {transform_indices = @transform_7, window_bounds = array<i64: 8, 64>}, {transform_indices = @transform_8, window_bounds = array<i64: 1, 8, 128>}, {transform_indices = @transform_9, window_bounds = array<i64: 1, 8, 128>}]} {
    %c0 = arith.constant 0 : index
    %c0_0 = arith.constant 0 : index
    %0 = vector.load %arg1[%c0, %c0_0] : memref<8x1024xbf16, #tpu.memory_space<vmem>>, vector<8x1024xbf16>
    %c0_1 = arith.constant 0 : index
    %c0_2 = arith.constant 0 : index
    %1 = vector.load %arg2[%c0_1, %c0_2] : memref<1024x64xbf16, #tpu.memory_space<vmem>>, vector<1024x64xbf16>
    %cst = arith.constant dense<0.000000e+00> : vector<8x64xf32>
    %2 = tpu.matmul %0, %1, %cst {dimension_numbers = #tpu.dot_dimension_numbers<[1], [0], [0], [1], [0, 0, 1, 1], [], []>} : vector<8x1024xbf16>, vector<1024x64xbf16>, vector<8x64xf32> -> vector<8x64xf32>
    %c0_3 = arith.constant 0 : index
    %c0_4 = arith.constant 0 : index
    %3 = vector.load %arg3[%c0_3, %c0_4] : memref<1x64xf32, #tpu.memory_space<vmem>>, vector<1x64xf32>
    %4 = vector.broadcast %3 : vector<1x64xf32> to vector<8x64xf32>
    %5 = arith.addf %2, %4 : vector<8x64xf32>
    %6 = vector.extract_strided_slice %5 {offsets = [0, 0], sizes = [8, 32], strides = [1, 1]} : vector<8x64xf32> to vector<8x32xf32>
    %7 = vector.extract_strided_slice %5 {offsets = [0, 32], sizes = [8, 32], strides = [1, 1]} : vector<8x64xf32> to vector<8x32xf32>
    %cst_5 = arith.constant 5.000000e-01 : f32
    %8 = vector.broadcast %cst_5 : f32 to vector<8x32xf32>
    %9 = arith.mulf %8, %7 : vector<8x32xf32>
    %10 = math.exp %9 : vector<8x32xf32>
    %c0_6 = arith.constant 0 : index
    %c0_7 = arith.constant 0 : index
    %11 = vector.load %arg6[%c0_6, %c0_7] : memref<8x32xf32, #tpu.memory_space<vmem>>, vector<8x32xf32>
    %12 = arith.mulf %11, %10 : vector<8x32xf32>
    %13 = arith.addf %6, %12 : vector<8x32xf32>
    %14 = arith.truncf %13 : vector<8x32xf32> to vector<8x32xbf16>
    %c0_8 = arith.constant 0 : index
    %c0_9 = arith.constant 0 : index
    %15 = vector.load %arg4[%c0_8, %c0_9] : memref<32x1024xbf16, #tpu.memory_space<vmem>>, vector<32x1024xbf16>
    %cst_10 = arith.constant dense<0.000000e+00> : vector<8x1024xf32>
    %16 = tpu.matmul %14, %15, %cst_10 {dimension_numbers = #tpu.dot_dimension_numbers<[1], [0], [0], [1], [0, 0, 1, 1], [], []>} : vector<8x32xbf16>, vector<32x1024xbf16>, vector<8x1024xf32> -> vector<8x1024xf32>
    %c0_11 = arith.constant 0 : index
    %c0_12 = arith.constant 0 : index
    %17 = vector.load %arg5[%c0_11, %c0_12] : memref<1x1024xf32, #tpu.memory_space<vmem>>, vector<1x1024xf32>
    %18 = vector.broadcast %17 : vector<1x1024xf32> to vector<8x1024xf32>
    %19 = arith.addf %16, %18 : vector<8x1024xf32>
    %c0_13 = arith.constant 0 : index
    %c0_14 = arith.constant 0 : index
    %20 = vector.load %arg8[%c0_13, %c0_14] : memref<8x64xf32, #tpu.memory_space<vmem>>, vector<8x64xf32>
    tpu.vector_store %arg8[%c0_13, %c0_14], %5 {strides = array<i32>} : memref<8x64xf32, #tpu.memory_space<vmem>>, vector<8x64xf32>,
    %c0_15 = arith.constant 0 : index
    %c0_16 = arith.constant 0 : index
    %21 = vector.load %arg7[%c0_15, %c0_16] : memref<8x1024xf32, #tpu.memory_space<vmem>>, vector<8x1024xf32>
    tpu.vector_store %arg7[%c0_15, %c0_16], %19 {strides = array<i32>} : memref<8x1024xf32, #tpu.memory_space<vmem>>, vector<8x1024xf32>,
    %22 = tpu.iota {dimensions = array<i32: 0>} : vector<8x1xi32>
    %c8_i32 = arith.constant 8 : i32
    %23 = arith.muli %arg0, %c8_i32 : i32
    %24 = vector.broadcast %23 : i32 to vector<8x1xi32>
    %25 = arith.addi %22, %24 : vector<8x1xi32>
    %c2_i32 = arith.constant 2 : i32
    %26 = vector.broadcast %c2_i32 : i32 to vector<8x1xi32>
    %27 = arith.cmpi slt, %25, %26 : vector<8x1xi32>
    %28 = arith.extui %27 : vector<8x1xi1> to vector<8x1xi32>
    %29 = arith.sitofp %28 : vector<8x1xi32> to vector<8x1xf32>
    %30 = arith.extf %0 : vector<8x1024xbf16> to vector<8x1024xf32>
    %31 = arith.subf %19, %30 : vector<8x1024xf32>
    %32 = vector.broadcast %29 : vector<8x1xf32> to vector<8x1024xf32>
    %33 = arith.mulf %31, %32 : vector<8x1024xf32>
    %34 = arith.mulf %33, %33 : vector<8x1024xf32>
    %35 = vector.shape_cast %34 : vector<8x1024xf32> to vector<1x8x1024xf32>
    %cst_17 = arith.constant dense<0.000000e+00> : vector<1xf32>
    %36 = vector.multi_reduction <add>, %35, %cst_17 [1, 2] : vector<1x8x1024xf32> to vector<1xf32>
    %37 = vector.shape_cast %36 : vector<1xf32> to vector<1x1x1xf32>
    %38 = vector.extract %37[0, 0, 0] : f32 from vector<1x1x1xf32>
    %cst_18 = arith.constant 1.000000e+00 : f32
    %39 = vector.broadcast %cst_18 : f32 to vector<8x32xf32>
    %40 = arith.addf %39, %7 : vector<8x32xf32>
    %41 = arith.mulf %6, %6 : vector<8x32xf32>
    %42 = arith.subf %40, %41 : vector<8x32xf32>
    %43 = math.exp %7 : vector<8x32xf32>
    %44 = arith.subf %42, %43 : vector<8x32xf32>
    %cst_19 = arith.constant dense<0.000000e+00> : vector<8xf32>
    %45 = vector.multi_reduction <add>, %44, %cst_19 [1] : vector<8x32xf32> to vector<8xf32>
    %46 = vector.shape_cast %45 : vector<8xf32> to vector<8x1xf32>
    %cst_20 = arith.constant -5.000000e-01 : f32
    %47 = vector.broadcast %cst_20 : f32 to vector<8x1xf32>
    %48 = arith.mulf %47, %46 : vector<8x1xf32>
    %49 = arith.mulf %48, %29 : vector<8x1xf32>
    %50 = vector.shape_cast %49 : vector<8x1xf32> to vector<1x8x1xf32>
    %cst_21 = arith.constant dense<0.000000e+00> : vector<1xf32>
    %51 = vector.multi_reduction <add>, %50, %cst_21 [1, 2] : vector<1x8x1xf32> to vector<1xf32>
    %52 = vector.shape_cast %51 : vector<1xf32> to vector<1x1x1xf32>
    %53 = vector.extract %52[0, 0, 0] : f32 from vector<1x1x1xf32>
    %54 = vector.broadcast %38 : f32 to vector<1x8x128xf32>
    %c0_22 = arith.constant 0 : index
    %c0_23 = arith.constant 0 : index
    %c0_24 = arith.constant 0 : index
    %55 = vector.load %arg9[%c0_22, %c0_23, %c0_24] : memref<1x8x128xf32, #tpu.memory_space<vmem>>, vector<1x8x128xf32>
    tpu.vector_store %arg9[%c0_22, %c0_23, %c0_24], %54 {strides = array<i32>} : memref<1x8x128xf32, #tpu.memory_space<vmem>>, vector<1x8x128xf32>,
    %56 = vector.broadcast %53 : f32 to vector<1x8x128xf32>
    %c0_25 = arith.constant 0 : index
    %c0_26 = arith.constant 0 : index
    %c0_27 = arith.constant 0 : index
    %57 = vector.load %arg10[%c0_25, %c0_26, %c0_27] : memref<1x8x128xf32, #tpu.memory_space<vmem>>, vector<1x8x128xf32>
    tpu.vector_store %arg10[%c0_25, %c0_26, %c0_27], %56 {strides = array<i32>} : memref<1x8x128xf32, #tpu.memory_space<vmem>>, vector<1x8x128xf32>,
    return
  }
  func.func @transform_0(%arg0: i32) -> (i32, i32) {
    %c0_i32 = arith.constant 0 : i32
    %c0_i32_0 = arith.constant 0 : i32
    return %arg0, %c0_i32 : i32, i32
  }
  func.func @transform_1(%arg0: i32) -> (i32, i32) {
    %c0_i32 = arith.constant 0 : i32
    %c0_i32_0 = arith.constant 0 : i32
    %c0_i32_1 = arith.constant 0 : i32
    return %c0_i32, %c0_i32_0 : i32, i32
  }
  func.func @transform_2(%arg0: i32) -> (i32, i32) {
    %c0_i32 = arith.constant 0 : i32
    %c0_i32_0 = arith.constant 0 : i32
    %c0_i32_1 = arith.constant 0 : i32
    return %c0_i32, %c0_i32_0 : i32, i32
  }
  func.func @transform_3(%arg0: i32) -> (i32, i32) {
    %c0_i32 = arith.constant 0 : i32
    %c0_i32_0 = arith.constant 0 : i32
    %c0_i32_1 = arith.constant 0 : i32
    return %c0_i32, %c0_i32_0 : i32, i32
  }
  func.func @transform_4(%arg0: i32) -> (i32, i32) {
    %c0_i32 = arith.constant 0 : i32
    %c0_i32_0 = arith.constant 0 : i32
    %c0_i32_1 = arith.constant 0 : i32
    return %c0_i32, %c0_i32_0 : i32, i32
  }
  func.func @transform_5(%arg0: i32) -> (i32, i32) {
    %c0_i32 = arith.constant 0 : i32
    %c0_i32_0 = arith.constant 0 : i32
    return %arg0, %c0_i32 : i32, i32
  }
  func.func @transform_6(%arg0: i32) -> (i32, i32) {
    %c0_i32 = arith.constant 0 : i32
    %c0_i32_0 = arith.constant 0 : i32
    return %arg0, %c0_i32 : i32, i32
  }
  func.func @transform_7(%arg0: i32) -> (i32, i32) {
    %c0_i32 = arith.constant 0 : i32
    %c0_i32_0 = arith.constant 0 : i32
    return %arg0, %c0_i32 : i32, i32
  }
  func.func @transform_8(%arg0: i32) -> (i32, i32, i32) {
    %c0_i32 = arith.constant 0 : i32
    %c0_i32_0 = arith.constant 0 : i32
    %c0_i32_1 = arith.constant 0 : i32
    return %arg0, %c0_i32, %c0_i32_0 : i32, i32, i32
  }
  func.func @transform_9(%arg0: i32) -> (i32, i32, i32) {
    %c0_i32 = arith.constant 0 : i32
    %c0_i32_0 = arith.constant 0 : i32
    %c0_i32_1 = arith.constant 0 : i32
    return %arg0, %c0_i32, %c0_i32_0 : i32, i32, i32
  }
}

</mosaic_0001>

<bundles_post_ra>
// kernel: tpu_custom_call.1
= control target key start
LH: loop header
LB: loop body
LE: loop exit
PB: predicated region body
PF: predicated region fallthrough
CT: control target
= control target key end

     0   :  { %15 = vsyncpa [#allocation3], 0  ;;  %s2049_s0 = inlined_call_operand.vmem [shape: bf16[8,1024], index: 0, kind: input, shape index: {}]   ;;  %s2050_s1 = inlined_call_operand.vmem [shape: bf16[1024,64], index: 1, kind: input, shape index: {}]   ;;  %s2051_s2 = inlined_call_operand.vmem [shape: f32[1,64], index: 2, kind: input, shape index: {}]   ;;  %s2052_s3 = inlined_call_operand.vmem [shape: bf16[32,1024], index: 3, kind: input, shape index: {}]   ;;  %s2053_s4 = inlined_call_operand.vmem [shape: f32[1,1024], index: 4, kind: input, shape index: {}]   ;;  %s2054_s5 = inlined_call_operand.vmem [shape: f32[8,32], index: 5, kind: input, shape index: {}]   ;;  %s2055_s6 = inlined_call_operand.hbm [shape: f32[8,1024], index: 6, kind: output, shape index: {0}]   ;;  %s2056_s7 = inlined_call_operand.hbm [shape: f32[8,64], index: 7, kind: output, shape index: {1}]   ;;  %s2057_s8 = inlined_call_operand.hbm [shape: f32[1,8,128], index: 8, kind: output, shape index: {2}]   ;;  %s2058_s9 = inlined_call_operand.hbm [shape: f32[1,8,128], index: 9, kind: output, shape index: {3}]  }
   0x1   :  { %16 = vsyncpa [#allocation5], 0  ;;  %v1415_v0 = vld [vmem:[%s2050_s1 + $0x38] sm:$0xff]  ;;  %v1414_v4 = vld [vmem:[%s2050_s1 + $0x30] sm:$0xff] }
   0x2   :  { %v1423_v1 = vld [vmem:[%s2050_s1 + $0x78] sm:$0xff]  ;;  %579 = vmatpush.bf16.msra.mxu0 %v1415_v0  ;;  %v1422_v5 = vld [vmem:[%s2050_s1 + $0x70] sm:$0xff]  ;;  %v1413_v8 = vld [vmem:[%s2050_s1 + $0x28] sm:$0xff] }
   0x3   :  { %v1431_v2 = vld [vmem:[%s2050_s1 + $0xb8] sm:$0xff]  ;;  %592 = vmatpush.bf16.msra.mxu1 %v1423_v1  ;;  %v1430_v6 = vld [vmem:[%s2050_s1 + $0xb0] sm:$0xff]  ;;  %v1421_v9 = vld [vmem:[%s2050_s1 + $0x68] sm:$0xff] }
   0x4   :  { %v1439_v3 = vld [vmem:[%s2050_s1 + $0xf8] sm:$0xff]  ;;  %605 = vmatpush.bf16.msra.mxu2 %v1431_v2  ;;  %v1438_v7 = vld [vmem:[%s2050_s1 + $0xf0] sm:$0xff]  ;;  %v1429_v10 = vld [vmem:[%s2050_s1 + $0xa8] sm:$0xff] }
   0x5   :  { %618 = vmatpush.bf16.msra.mxu3 %v1439_v3  ;;  %v1437_v11 = vld [vmem:[%s2050_s1 + $0xe8] sm:$0xff]  ;;  %v1412_v12 = vld [vmem:[%s2050_s1 + $0x20] sm:$0xff]  ;;  %v1411_v16 = vld [vmem:[%s2050_s1 + $0x18] sm:$0xff] }
   0x6   :  { %580 = vmatpush.bf16.msra.mxu0 %v1414_v4  ;;  %v1420_v13 = vld [vmem:[%s2050_s1 + $0x60] sm:$0xff]  ;;  %v1419_v17 = vld [vmem:[%s2050_s1 + $0x58] sm:$0xff]  ;;  %v1410_v20 = vld [vmem:[%s2050_s1 + $0x10] sm:$0xff] }
   0x7   :  { %593 = vmatpush.bf16.msra.mxu1 %v1422_v5  ;;  %v1428_v14 = vld [vmem:[%s2050_s1 + $0xa0] sm:$0xff]  ;;  %v1427_v18 = vld [vmem:[%s2050_s1 + $0x98] sm:$0xff]  ;;  %v1418_v21 = vld [vmem:[%s2050_s1 + $0x50] sm:$0xff] }
   0x8   :  { %606 = vmatpush.bf16.msra.mxu2 %v1430_v6  ;;  %v1436_v15 = vld [vmem:[%s2050_s1 + $0xe0] sm:$0xff]  ;;  %v1435_v19 = vld [vmem:[%s2050_s1 + $0xd8] sm:$0xff] }
   0x9   :  { %619 = vmatpush.bf16.msra.mxu3 %v1438_v7 }
   0xa   :  { %581 = vmatpush.bf16.msra.mxu0 %v1413_v8 }
   0xb   :  { %594 = vmatpush.bf16.msra.mxu1 %v1421_v9 }
   0xc   :  { %607 = vmatpush.bf16.msra.mxu2 %v1429_v10 }
   0xd   :  { %620 = vmatpush.bf16.msra.mxu3 %v1437_v11 }
   0xe   :  { %582 = vmatpush.bf16.msra.mxu0 %v1412_v12 }
   0xf   :  { %595 = vmatpush.bf16.msra.mxu1 %v1420_v13 }
  0x10   :  { %608 = vmatpush.bf16.msra.mxu2 %v1428_v14 }
  0x11   :  { %621 = vmatpush.bf16.msra.mxu3 %v1436_v15 }
  0x12   :  { %583 = vmatpush.bf16.msra.mxu0 %v1411_v16 }
  0x13   :  { %596 = vmatpush.bf16.msra.mxu1 %v1419_v17 }
  0x14   :  { %17 = vsyncpa [#allocation8], 0  ;;  %609 = vmatpush.bf16.msra.mxu2 %v1427_v18  ;;  %v1426_v22 = vld [vmem:[%s2050_s1 + $0x90] sm:$0xff]  ;;  %v1409_v24 = vld [vmem:[%s2050_s1 + $0x8] sm:$0xff]  ;;  %vm916_vm0 = vcmask 523264   ;;  %s1606_s13 = smov 96  }
  0x15   :  { %622 = vmatpush.bf16.msra.mxu3 %v1435_v19  ;;  %v1434_v23 = vld [vmem:[%s2050_s1 + $0xd0] sm:$0xff]  ;;  %v1417_v25 = vld [vmem:[%s2050_s1 + $0x48] sm:$0xff]  ;;  %v1755_v29 = vld [vmem:[%s2049_s0] sm:$0xff]  ;;  %s1607_s14 = smov 32   ;;  %vm808_vm1 = vcmask 261120   ;;  %vm1001_vm3 = vcmask 7168  }
  0x16   :  { %584 = vmatpush.bf16.msra.mxu0 %v1410_v20  ;;  %v1425_v26 = vld [vmem:[%s2050_s1 + $0x88] sm:$0xff]  ;;  %v1408_v30 = vld [vmem:[%s2050_s1] sm:$0xff]  ;;  %v171_v33 = vunpack.c.l.b16 %v1755_v29  ;;  %v172_v37 = vunpack.c.h.b16 %v1755_v29  ;;  %v1447_v38 = vld [vmem:[%s2050_s1 + $0x138] sm:$0xff]  ;;  %s1034_s19 = sshll.u32 %s2056_s7, 4  ;;  %s1023_s22 = sshll.u32 %s2055_s6, 4  ;;  %s1035_s19 = int_to_ptr.hbm [resolvable:$true] %s1034_s19  ;;  %s1024_s22 = int_to_ptr.hbm [resolvable:$true] %s1023_s22 }
  0x17   :  { %597 = vmatpush.bf16.msra.mxu1 %v1418_v21  ;;  %v1433_v27 = vld [vmem:[%s2050_s1 + $0xc8] sm:$0xff]  ;;  %v1416_v31 = vld [vmem:[%s2050_s1 + $0x40] sm:$0xff]  ;;  %v1455_v39 = vld [vmem:[%s2050_s1 + $0x178] sm:$0xff]  ;;  %s1610_s23 = smov [#allocation2]   ;;  %s1045_s28 = sshll.u32 %s2057_s8, 4  ;;  %s1046_s28 = int_to_ptr.hbm [resolvable:$true] %s1045_s28 }
  0x18   :  { %610 = vmatpush.bf16.msra.mxu2 %v1426_v22  ;;  %v1750_v28 = vld [vmem:[%s2049_s0 + $0x8] sm:$0xff]  ;;  %v1424_v34 = vld [vmem:[%s2050_s1 + $0x80] sm:$0xff]  ;;  %v1463_v40 = vld [vmem:[%s2050_s1 + $0x1b8] sm:$0xff]  ;;  %v179_v43 = vpack.c.b16 %v171_v33, %v171_v33  ;;  %v180_v45 = vpack.c.b16 %v172_v37, %v172_v37  ;;  %s1021_s24 = sshll.u32 %s1610_s23, 4  ;;  %s1056_s30 = sshll.u32 %s2058_s9, 4  ;;  %s1022_s24 = int_to_ptr.vmem [resolvable:$true] %s1021_s24  ;;  %s1057_s30 = int_to_ptr.hbm [resolvable:$true] %s1056_s30 }
  0x19   :  { %623 = vmatpush.bf16.msra.mxu3 %v1434_v23  ;;  %v173_v32 = vunpack.c.l.b16 %v1750_v28  ;;  %v1432_v35 = vld [vmem:[%s2050_s1 + $0xc0] sm:$0xff]  ;;  %v174_v36 = vunpack.c.h.b16 %v1750_v28  ;;  %v1471_v41 = vld [vmem:[%s2050_s1 + $0x1f8] sm:$0xff]  ;;  %v1446_v46 = vld [vmem:[%s2050_s1 + $0x130] sm:$0xff]  ;;  %s1612_s10 = smov [#allocation7]  }
  0x1a   :  { %585 = vmatpush.bf16.msra.mxu0 %v1409_v24  ;;  %v1454_v47 = vld [vmem:[%s2050_s1 + $0x170] sm:$0xff]  ;;  %v1445_v50 = vld [vmem:[%s2050_s1 + $0x128] sm:$0xff]  ;;  %v1444_v54 = vld [vmem:[%s2050_s1 + $0x120] sm:$0xff]  ;;  %s1054_s8 = sshll.u32 %s1612_s10, 4  ;;  %s1055_s8 = int_to_ptr.vmem [resolvable:$true] %s1054_s8 }
  0x1b   :  { %598 = vmatpush.bf16.msra.mxu1 %v1417_v25  ;;  %v181_v42 = vpack.c.b16 %v173_v32, %v173_v32  ;;  %v182_v44 = vpack.c.b16 %v174_v36, %v174_v36  ;;  %v1462_v48 = vld [vmem:[%s2050_s1 + $0x1b0] sm:$0xff]  ;;  %v1453_v51 = vld [vmem:[%s2050_s1 + $0x168] sm:$0xff]  ;;  %v1452_v55 = vld [vmem:[%s2050_s1 + $0x160] sm:$0xff] }
  0x1c   :  { %611 = vmatpush.bf16.msra.mxu2 %v1425_v26  ;;  %v1470_v49 = vld [vmem:[%s2050_s1 + $0x1f0] sm:$0xff]  ;;  %v1461_v52 = vld [vmem:[%s2050_s1 + $0x1a8] sm:$0xff]  ;;  %v1460_v56 = vld [vmem:[%s2050_s1 + $0x1a0] sm:$0xff] }
  0x1d   :  { %624 = vmatpush.bf16.msra.mxu3 %v1433_v27  ;;  %v1469_v53 = vld [vmem:[%s2050_s1 + $0x1e8] sm:$0xff]  ;;  %v1468_v57 = vld [vmem:[%s2050_s1 + $0x1e0] sm:$0xff]  ;;  %v1443_v58 = vld [vmem:[%s2050_s1 + $0x118] sm:$0xff] }
  0x1e   :  { %586 = vmatpush.bf16.msra.mxu0 %v1408_v30  ;;  %v1451_v59 = vld [vmem:[%s2050_s1 + $0x158] sm:$0xff]  ;;  %v1442_v62 = vld [vmem:[%s2050_s1 + $0x110] sm:$0xff]  ;;  %v1441_v2 = vld [vmem:[%s2050_s1 + $0x108] sm:$0xff] }
  0x1f   :  { %599 = vmatpush.bf16.msra.mxu1 %v1416_v31  ;;  %v1459_v60 = vld [vmem:[%s2050_s1 + $0x198] sm:$0xff]  ;;  %v1450_v63 = vld [vmem:[%s2050_s1 + $0x150] sm:$0xff]  ;;  %v1449_v3 = vld [vmem:[%s2050_s1 + $0x148] sm:$0xff] }
  0x20   :  { %612 = vmatpush.bf16.msra.mxu2 %v1424_v34  ;;  %v1467_v61 = vld [vmem:[%s2050_s1 + $0x1d8] sm:$0xff]  ;;  %v1458_v0 = vld [vmem:[%s2050_s1 + $0x190] sm:$0xff]  ;;  %v1457_v5 = vld [vmem:[%s2050_s1 + $0x188] sm:$0xff] }
  0x21   :  { %625 = vmatpush.bf16.msra.mxu3 %v1432_v35  ;;  %587 = vmatmul.bf16.vlgmr.msra.gmra.mxu0 %v179_v43  ;;  %v1466_v1 = vld [vmem:[%s2050_s1 + $0x1d0] sm:$0xff]  ;;  %v1465_v6 = vld [vmem:[%s2050_s1 + $0x1c8] sm:$0xff]  ;;  %v1865_v7 = vld [vmem:[%s2049_s0 + $0x18] sm:$0xff] }
  0x22   :  { %631 = vmatpush.bf16.msrb.mxu0 %v1447_v38  ;;  %600 = vmatmul.bf16.vlgmr.msra.gmra.mxu1 %v180_v45  ;;  %v1854_v4 = vld [vmem:[%s2049_s0 + $0x10] sm:$0xff]  ;;  %v1440_v10 = vld [vmem:[%s2050_s1 + $0x100] sm:$0xff]  ;;  %v177_v12 = vunpack.c.l.b16 %v1865_v7  ;;  %v178_v13 = vunpack.c.h.b16 %v1865_v7  ;;  %v1485_v43 = vld [vmem:[%s2052_s3 + $0x64] sm:$0xf0] }
  0x23   :  { %644 = vmatpush.bf16.msrb.mxu1 %v1455_v39  ;;  %613 = vmatmul.bf16.vlgmr.msra.gmra.mxu2 %v181_v42  ;;  %v175_v8 = vunpack.c.l.b16 %v1854_v4  ;;  %v176_v9 = vunpack.c.h.b16 %v1854_v4  ;;  %v1448_v11 = vld [vmem:[%s2050_s1 + $0x140] sm:$0xff]  ;;  %v1377_v42 = vld [vmem:[%s2052_s3 + $0x48] sm:$0xf] }
  0x24   :  { %657 = vmatpush.bf16.msrb.mxu2 %v1463_v40  ;;  %626 = vmatmul.bf16.vlgmr.msra.gmra.mxu3 %v182_v44  ;;  %v1456_v14 = vld [vmem:[%s2050_s1 + $0x180] sm:$0xff]  ;;  %v185_v18 = vpack.c.b16 %v177_v12, %v177_v12  ;;  %v186_v19 = vpack.c.b16 %v178_v13, %v178_v13  ;;  %v1378_v45 = vor.u32 %v1485_v43, %v1377_v42  ;;  %v1385_v13 = vld [vmem:[%s2052_s3 + $0x50] sm:$0xf] }
  0x25   :  { %670 = vmatpush.bf16.msrb.mxu3 %v1471_v41  ;;  %v1464_v15 = vld [vmem:[%s2050_s1 + $0x1c0] sm:$0xff]  ;;  %v183_v16 = vpack.c.b16 %v175_v8, %v175_v8  ;;  %v184_v17 = vpack.c.b16 %v176_v9, %v176_v9 }
  0x26   :  { %632 = vmatpush.bf16.msrb.mxu0 %v1446_v46  ;;  %v1499_v26 = vld [vmem:[%s2051_s2] ss:$0 sm:$0xff]  ;;  %v1480_v36 = vld [vmem:[%s2052_s3 + $0x44] sm:$0xf]  ;;  %v1481_v46 = vld [vmem:[%s2052_s3 + $0x4c] sm:$0xf] }
  0x27   :  { %645 = vmatpush.bf16.msrb.mxu1 %v1454_v47  ;;  %v1369_v34 = vld [vmem:[%s2052_s3 + $0x40] sm:$0xf]  ;;  %v1371_v41 = vld [vmem:[%s2052_s3 + $0x60] sm:$0xf0]  ;;  %v1379_v47 = vld [vmem:[%s2052_s3 + $0x68] sm:$0xf0] }
  0x28   :  { %658 = vmatpush.bf16.msrb.mxu2 %v1462_v48  ;;  %v1484_v35 = vld [vmem:[%s2052_s3 + $0x5c] sm:$0xf0]  ;;  %v1374_v44 = vor.u32 %v1480_v36, %v1371_v41  ;;  %s1611_s2 = smov [#allocation6]  }
  0x29   :  { %671 = vmatpush.bf16.msrb.mxu3 %v1470_v49  ;;  %v1370_v40 = vor.u32 %v1484_v35, %v1369_v34  ;;  %v1382_v49 = vor.u32 %v1481_v46, %v1379_v47  ;;  %v1479_v34 = vld [vmem:[%s2052_s3 + $0x34] sm:$0xf0]  ;;  %v1475_v35 = vld [vmem:[%s2052_s3 + $0x1c] sm:$0xf]  ;;  %s1043_s25 = sshll.u32 %s1611_s2, 4  ;;  %s1044_s25 = int_to_ptr.vmem [resolvable:$true] %s1043_s25 }
  0x2a   :  { %633 = vmatpush.bf16.msrb.mxu0 %v1445_v50 }
  0x2b   :  { %646 = vmatpush.bf16.msrb.mxu1 %v1453_v51 }
  0x2c   :  { %659 = vmatpush.bf16.msrb.mxu2 %v1461_v52 }
  0x2d   :  { %672 = vmatpush.bf16.msrb.mxu3 %v1469_v53 }
  0x2e   :  { %634 = vmatpush.bf16.msrb.mxu0 %v1444_v54 }
  0x2f   :  { %647 = vmatpush.bf16.msrb.mxu1 %v1452_v55 }
  0x30   :  { %660 = vmatpush.bf16.msrb.mxu2 %v1460_v56 }
  0x31   :  { %673 = vmatpush.bf16.msrb.mxu3 %v1468_v57 }
  0x32   :  { %635 = vmatpush.bf16.msrb.mxu0 %v1443_v58 }
  0x33   :  { %648 = vmatpush.bf16.msrb.mxu1 %v1451_v59 }
  0x34   :  { %661 = vmatpush.bf16.msrb.mxu2 %v1459_v60 }
  0x35   :  { %674 = vmatpush.bf16.msrb.mxu3 %v1467_v61 }
  0x36   :  { %636 = vmatpush.bf16.msrb.mxu0 %v1442_v62 }
  0x37   :  { %649 = vmatpush.bf16.msrb.mxu1 %v1450_v63  ;;  %v1337_v63 = vld [vmem:[%s2052_s3] sm:$0xf] }
  0x38   :  { %662 = vmatpush.bf16.msrb.mxu2 %v1458_v0  ;;  %v1476_v0 = vld [vmem:[%s2052_s3 + $0x1c] sm:$0xf0] }
  0x39   :  { %675 = vmatpush.bf16.msrb.mxu3 %v1466_v1  ;;  %v1472_v1 = vld [vmem:[%s2052_s3 + $0x4] sm:$0xf] }
  0x3a   :  { %637 = vmatpush.bf16.msrb.mxu0 %v1441_v2  ;;  %v1338_v2 = vor.u32 %v1476_v0, %v1337_v63 }
  0x3b   :  { %650 = vmatpush.bf16.msrb.mxu1 %v1449_v3  ;;  %v1339_v3 = vld [vmem:[%s2052_s3 + $0x20] sm:$0xf0] }
  0x3c   :  { %663 = vmatpush.bf16.msrb.mxu2 %v1457_v5  ;;  %v1345_v5 = vld [vmem:[%s2052_s3 + $0x8] sm:$0xf]  ;;  %v1342_v8 = vor.u32 %v1472_v1, %v1339_v3  ;;  %v936_v3 = vunpack.c.l.bf16 %v1750_v28 }
  0x3d   :  { %676 = vmatpush.bf16.msrb.mxu3 %v1465_v6  ;;  %v1477_v6 = vld [vmem:[%s2052_s3 + $0x24] sm:$0xf0] }
  0x3e   :  { %638 = vmatpush.bf16.msrb.mxu0 %v1440_v10  ;;  %v1346_v9 = vor.u32 %v1477_v6, %v1345_v5  ;;  %v1473_v10 = vld [vmem:[%s2052_s3 + $0xc] sm:$0xf]  ;;  %v1608_v5 = vmov 0.0  }
  0x3f   :  { %651 = vmatpush.bf16.msrb.mxu1 %v1448_v11  ;;  %v1347_v11 = vld [vmem:[%s2052_s3 + $0x28] sm:$0xf0] }
  0x40   :  { %664 = vmatpush.bf16.msrb.mxu2 %v1456_v14  ;;  %v1350_v12 = vor.u32 %v1473_v10, %v1347_v11  ;;  %v1486_v14 = vld [vmem:[%s2052_s3 + $0x6c] sm:$0xf0] }
  0x41   :  { %677 = vmatpush.bf16.msrb.mxu3 %v1464_v15  ;;  %639 = vmatmul.bf16.vlgmr.msrb.gmra.mxu0 %v183_v16  ;;  %v1482_v15 = vld [vmem:[%s2052_s3 + $0x54] sm:$0xf]  ;;  %v1386_v16 = vor.u32 %v1486_v14, %v1385_v13 }
  0x42   :  { %652 = vmatmul.bf16.vlgmr.msrb.gmra.mxu1 %v184_v17  ;;  %818 = vmatpush.bf16.msra.mxu0 %v1370_v40  ;;  %v1387_v17 = vld [vmem:[%s2052_s3 + $0x70] sm:$0xf0] }
  0x43   :  { %665 = vmatmul.bf16.vlgmr.msrb.gmra.mxu2 %v185_v18  ;;  %831 = vmatpush.bf16.msra.mxu1 %v1374_v44  ;;  %v1393_v18 = vld [vmem:[%s2052_s3 + $0x58] sm:$0xf] }
  0x44   :  { %678 = vmatmul.bf16.vlgmr.msrb.gmra.mxu3 %v186_v19  ;;  %844 = vmatpush.bf16.msra.mxu2 %v1378_v45  ;;  %v1487_v19 = vld [vmem:[%s2052_s3 + $0x74] sm:$0xf0] }
  0x45   :  { %857 = vmatpush.bf16.msra.mxu3 %v1382_v49 }
  0x46   :  { %819 = vmatpush.bf16.msra.mxu0 %v1338_v2 }
  0x47   :  { %832 = vmatpush.bf16.msra.mxu1 %v1342_v8 }
  0x48   :  { %845 = vmatpush.bf16.msra.mxu2 %v1346_v9 }
  0x49   :  { %858 = vmatpush.bf16.msra.mxu3 %v1350_v12 }
  0x4a   :  { %870 = vmatpush.bf16.msrb.mxu0 %v1386_v16  ;;  %v937_v16 = vunpack.c.h.bf16 %v1750_v28 }
  0x9e   :  { %v588_v20 = vpop.f32.mrf.mxu0 }
  0x9f   :  { %v601_v21 = vpop.f32.mrf.mxu1  ;;  %v589_v31 = vadd.f32 %v1499_v26, %v588_v20  ;;  %v1390_v20 = vor.u32 %v1482_v15, %v1387_v17  ;;  %v1478_v26 = vld [vmem:[%s2052_s3 + $0x2c] sm:$0xf0] }
  0xa1   :  { %v602_v32 = vadd.f32 %v601_v21, %v589_v31  ;;  %v1394_v21 = vor.u32 %v1487_v19, %v1393_v18  ;;  %883 = vmatpush.bf16.msrb.mxu1 %v1390_v20 }
  0xa3   :  { %896 = vmatpush.bf16.msrb.mxu2 %v1394_v21 }
  0xa6   :  { %v614_v22 = vpop.f32.mrf.mxu2  ;;  %v590_v24 = vpop.f32.mrf.mxu0 }
  0xa7   :  { %v627_v23 = vpop.f32.mrf.mxu3  ;;  %v603_v25 = vpop.f32.mrf.mxu1  ;;  %v615_v33 = vadd.f32 %v614_v22, %v602_v32  ;;  %v1483_v22 = vld [vmem:[%s2052_s3 + $0x5c] sm:$0xf]  ;;  %v1353_v24 = vld [vmem:[%s2052_s3 + $0x10] sm:$0xf] }
  0xa8   :  { %v1354_v31 = vor.u32 %v1478_v26, %v1353_v24 }
  0xa9   :  { %v628_v37 = vadd.f32 %v627_v23, %v615_v33  ;;  %v1395_v23 = vld [vmem:[%s2052_s3 + $0x78] sm:$0xf0]  ;;  %v1361_v33 = vld [vmem:[%s2052_s3 + $0x18] sm:$0xf] }
  0xaa   :  { %v1398_v25 = vor.u32 %v1483_v22, %v1395_v23  ;;  %v1362_v36 = vor.u32 %v1479_v34, %v1361_v33  ;;  %871 = vmatpush.bf16.msrb.mxu0 %v1354_v31  ;;  %v939_v31 = vunpack.c.h.bf16 %v1854_v4 }
  0xac   :  { %909 = vmatpush.bf16.msrb.mxu3 %v1398_v25  ;;  %897 = vmatpush.bf16.msrb.mxu2 %v1362_v36  ;;  %v938_v25 = vunpack.c.l.bf16 %v1854_v4  ;;  %v941_v4 = vunpack.c.h.bf16 %v1865_v7 }
  0xae   :  { %v616_v27 = vpop.f32.mrf.mxu2 }
  0xaf   :  { %v629_v30 = vpop.f32.mrf.mxu3  ;;  %v1474_v27 = vld [vmem:[%s2052_s3 + $0x14] sm:$0xf] }
  0xb0   :  { %v1355_v30 = vld [vmem:[%s2052_s3 + $0x30] sm:$0xf0] }
  0xb1   :  { %v1358_v32 = vor.u32 %v1474_v27, %v1355_v30 }
  0xb3   :  { %884 = vmatpush.bf16.msrb.mxu1 %v1358_v32 }
  0xbe   :  { %v640_v38 = vpop.f32.mrf.mxu0 }
  0xbf   :  { %v653_v39 = vpop.f32.mrf.mxu1  ;;  %v641_v48 = vadd.f32 %v640_v38, %v628_v37  ;;  %v1363_v37 = vld [vmem:[%s2052_s3 + $0x38] sm:$0xf0] }
  0xc0   :  { %v1366_v38 = vor.u32 %v1475_v35, %v1363_v37 }
  0xc1   :  { %v654_v50 = vadd.f32 %v653_v39, %v641_v48  ;;  %v686_v39 = vld [vmem:[%s2054_s5] sm:$0xff] }
  0xc2   :  { %910 = vmatpush.bf16.msrb.mxu3 %v1366_v38 }
  0xc6   :  { %v666_v51 = vpop.f32.mrf.mxu2  ;;  %v642_v54 = vpop.f32.mrf.mxu0 }
  0xc7   :  { %v679_v52 = vpop.f32.mrf.mxu3  ;;  %v667_v53 = vadd.f32 %v666_v51, %v654_v50  ;;  %v655_v55 = vpop.f32.mrf.mxu1  ;;  %v2007_v50 = vld [vmem:[%s2053_s4] sm:$0xff]  ;;  %s1609_s4 = smov [#allocation4]  }
  0xc8   :  { %v712_v54 = vperm.slane %v2007_v50, 0  ;;  %v713_v55 = vperm.slane %v2007_v50, 1  ;;  %v714_v63 = vperm.slane %v2007_v50, 2  ;;  %v715_v0 = vperm.slane %v2007_v50, 3 }
  0xc9   :  { %v1910_v56 = vadd.f32 %v679_v52, %v667_v53  ;;  %v926_v53 = vlaneseq  ;;  %v716_v18 = vperm.slane %v2007_v50, 4  ;;  %v717_v19 = vperm.slane %v2007_v50, 5 }
  0xca   :  { %v718_v38 = vperm.slane %v2007_v50, 6 }
  0xcb   :  { %v683_v57 = vmul.f32 0.5, %v1910_v56  ;;  %917 = vst.msk [vmem:[#allocation4] sm:$0xff] %vm916_vm0, %v1910_v56  ;;  %v983_v62 = vmul.f32 %v1910_v56, %v1910_v56  ;;  %v989_v41 = vmul.f32 1.442695, %v1910_v56  ;;  %v982_v45 = vadd.f32 1.0, %v1910_v56 }
  0xcd   :  { %v684_v58 = vmul.f32 1.442695, %v683_v57  ;;  %v927_v57 = vshrl.u32 %v926_v53, 7 }
  0xce   :  { %v668_v59 = vpop.f32.mrf.mxu2 }
  0xcf   :  { %v681_v60 = vpop.f32.mrf.mxu3  ;;  %1500 = vpow2.f32 %v684_v58  ;;  %vm931_vm2 = vcmp.lt.s32.totalorder %v927_v57, 2 }
  0xd0   :  { %1502 = vpow2.f32 %v989_v41  ;;  %v2017_v6 = vsel %vm931_vm2, 1.0, %v1608_v5 }
  0xd5   :  { %v1501_v61 = vpop.eup %1500 }
  0xd6   :  { %688 = vrot.lane.b32.xlu0 %v1501_v61, %s1606_s13  ;;  %v1503_v48 = vpop.eup %1502  ;;  %v934_v61 = vunpack.c.l.bf16 %v1755_v29 }
  0xde   :  { %985 = vrot.lane.b32.xlu0 %v983_v62, %s1607_s14  ;;  %v935_v62 = vunpack.c.h.bf16 %v1755_v29 }
 0x148   :  { %v689_v40 = vpop.permute.xlu0 %688 }
 0x149   :  { %v691_v42 = vmul.f32 %v689_v40, %v686_v39  ;;  %v719_v39 = vperm.slane %v2007_v50, 7 }
 0x14b   :  { %v692_v43 = vadd.f32 %v691_v42, %v1910_v56  ;;  %v940_v42 = vunpack.c.l.bf16 %v1865_v7 }
 0x14d   :  { %v693_v44 = vpack.c.bf16 %v692_v43, %v692_v43 }
 0x14f   :  { %1399 = vmatmul.msk.bf16.vlgmr.msra.gmra.mxu0 %vm808_vm1, %v693_v44  ;;  %1400 = vmatmul.msk.bf16.vlgmr.msra.gmra.mxu1 %vm808_vm1, %v693_v44 }
 0x150   :  { %1401 = vmatmul.msk.bf16.vlgmr.msra.gmra.mxu2 %vm808_vm1, %v693_v44  ;;  %1402 = vmatmul.msk.bf16.vlgmr.msra.gmra.mxu3 %vm808_vm1, %v693_v44  ;;  %v986_v46 = vpop.permute.xlu0 %985 }
 0x151   :  { %v988_v47 = vsub.f32 %v982_v45, %v986_v46 }
 0x153   :  { %v991_v49 = vsub.f32 %v988_v47, %v1503_v48 }
 0x155   :  { %993 = vrot.lane.b32.xlu1 %v991_v49, %s1606_s13  ;;  %s1032_s13 = sshll.u32 %s1609_s4, 4  ;;  %s1033_s13 = int_to_ptr.vmem [resolvable:$true] %s1032_s13 }
 0x156   :  { %1037 = dma.vmem_to_hbm [thread:$0]  %s1033_s13, 128, %s1035_s19, [#allocation5]  }
 0x15f   :  { %1403 = vmatmul.msk.bf16.vlgmr.msrb.gmra.mxu0 %vm808_vm1, %v693_v44  ;;  %1404 = vmatmul.msk.bf16.vlgmr.msrb.gmra.mxu1 %vm808_vm1, %v693_v44 }
 0x160   :  { %1405 = vmatmul.msk.bf16.vlgmr.msrb.gmra.mxu2 %vm808_vm1, %v693_v44  ;;  %1406 = vmatmul.msk.bf16.vlgmr.msrb.gmra.mxu3 %vm808_vm1, %v693_v44 }
 0x1c7   :  { %v994_v51 = vpop.permute.xlu1 %993 }
 0x1c8   :  { %v996_v52 = vsel %vm808_vm1, %v994_v51, 0.0 }
 0x1c9   :  { %997 = vadd.xlane.f32.xlu1 %v996_v52 }
 0x1cc   :  { %v821_v56 = vpop.f32.mrf.mxu0  ;;  %v834_v58 = vpop.f32.mrf.mxu1 }
 0x1cd   :  { %v822_v59 = vadd.f32 %v821_v56, %v712_v54  ;;  %v835_v60 = vadd.f32 %v834_v58, %v713_v55 }
 0x1cf   :  { %918 = vst [vmem:[#allocation2] sm:$0xff] %v822_v59  ;;  %v942_v1 = vsub.f32 %v822_v59, %v934_v61  ;;  %v943_v2 = vsub.f32 %v835_v60, %v935_v62 }
 0x1d0   :  { %919 = vst [vmem:[#allocation2 + $0x8] sm:$0xff] %v835_v60 }
 0x1d1   :  { %v950_v13 = vmul.f32 %v2017_v6, %v942_v1  ;;  %v951_v14 = vmul.f32 %v2017_v6, %v943_v2 }
 0x1d3   :  { %v847_v8 = vpop.f32.mrf.mxu2  ;;  %v860_v9 = vpop.f32.mrf.mxu3  ;;  %v958_v20 = vmul.f32 %v950_v13, %v950_v13  ;;  %v959_v21 = vmul.f32 %v951_v14, %v951_v14 }
 0x1d4   :  { %v848_v10 = vadd.f32 %v847_v8, %v714_v63  ;;  %v861_v11 = vadd.f32 %v860_v9, %v715_v0  ;;  %v823_v12 = vpop.f32.mrf.mxu0  ;;  %v836_v29 = vpop.f32.mrf.mxu1 }
 0x1d5   :  { %v966_v33 = vadd.f32 %v959_v21, %v958_v20 }
 0x1d6   :  { %920 = vst [vmem:[#allocation2 + $0x10] sm:$0xff] %v848_v10  ;;  %v944_v15 = vsub.f32 %v848_v10, %v936_v3  ;;  %v945_v22 = vsub.f32 %v861_v11, %v937_v16 }
 0x1d7   :  { %921 = vst [vmem:[#allocation2 + $0x18] sm:$0xff] %v861_v11 }
 0x1d8   :  { %v952_v17 = vmul.f32 %v2017_v6, %v944_v15  ;;  %v953_v34 = vmul.f32 %v2017_v6, %v945_v22 }
 0x1da   :  { %v960_v26 = vmul.f32 %v952_v17, %v952_v17  ;;  %v961_v41 = vmul.f32 %v953_v34, %v953_v34 }
 0x1db   :  { %v849_v23 = vpop.f32.mrf.mxu2  ;;  %v862_v24 = vpop.f32.mrf.mxu3 }
 0x1dc   :  { %v873_v27 = vpop.f32.mrf.mxu0  ;;  %v886_v30 = vpop.f32.mrf.mxu1  ;;  %v967_v36 = vadd.f32 %v966_v33, %v960_v26 }
 0x1dd   :  { %v874_v28 = vadd.f32 %v873_v27, %v716_v18  ;;  %v887_v32 = vadd.f32 %v886_v30, %v717_v19 }
 0x1de   :  { %v968_v46 = vadd.f32 %v967_v36, %v961_v41 }
 0x1df   :  { %922 = vst [vmem:[#allocation2 + $0x20] sm:$0xff] %v874_v28  ;;  %v946_v35 = vsub.f32 %v874_v28, %v938_v25  ;;  %v947_v37 = vsub.f32 %v887_v32, %v939_v31 }
 0x1e0   :  { %923 = vst [vmem:[#allocation2 + $0x28] sm:$0xff] %v887_v32 }
 0x1e1   :  { %v954_v40 = vmul.f32 %v2017_v6, %v946_v35  ;;  %v955_v47 = vmul.f32 %v2017_v6, %v947_v37 }
 0x1e3   :  { %v962_v43 = vmul.f32 %v954_v40, %v954_v40  ;;  %v899_v44 = vpop.f32.mrf.mxu2  ;;  %v912_v45 = vpop.f32.mrf.mxu3  ;;  %v963_v55 = vmul.f32 %v955_v47, %v955_v47 }
 0x1e4   :  { %v900_v48 = vadd.f32 %v899_v44, %v718_v38  ;;  %v913_v49 = vadd.f32 %v912_v45, %v719_v39  ;;  %v875_v51 = vpop.f32.mrf.mxu0  ;;  %v888_v52 = vpop.f32.mrf.mxu1 }
 0x1e5   :  { %v969_v54 = vadd.f32 %v968_v46, %v962_v43 }
 0x1e6   :  { %924 = vst [vmem:[#allocation2 + $0x30] sm:$0xff] %v900_v48  ;;  %v948_v53 = vsub.f32 %v900_v48, %v940_v42  ;;  %v949_v50 = vsub.f32 %v913_v49, %v941_v4 }
 0x1e7   :  { %925 = vst [vmem:[#allocation2 + $0x38] sm:$0xff] %v913_v49  ;;  %v970_v58 = vadd.f32 %v969_v54, %v963_v55 }
 0x1e8   :  { %v956_v56 = vmul.f32 %v2017_v6, %v948_v53  ;;  %v957_v7 = vmul.f32 %v2017_v6, %v949_v50  ;;  %1026 = dma.vmem_to_hbm [thread:$0]  %s1022_s24, 1024, %s1024_s22, [#allocation3]  }
 0x1ea   :  { %v964_v57 = vmul.f32 %v956_v56, %v956_v56  ;;  %v965_v61 = vmul.f32 %v957_v7, %v957_v7 }
 0x1eb   :  { %v901_v59 = vpop.f32.mrf.mxu2  ;;  %v914_v60 = vpop.f32.mrf.mxu3 }
 0x1ec   :  { %v971_v62 = vadd.f32 %v970_v58, %v964_v57 }
 0x1ee   :  { %v972_v63 = vadd.f32 %v971_v62, %v965_v61 }
 0x1f0   :  { %973 = vadd.xlane.f32.xlu2 %v972_v63 }
 0x23c   :  { %v998_v0 = vpop.xlane.xlu1 %997 }
 0x23d   :  { %v999_v1 = vmul.f32 -0.5, %v998_v0 }
 0x23f   :  { %v1000_v2 = vmul.f32 %v2017_v6, %v999_v1 }
 0x241   :  { %v1002_v3 = vsel %vm1001_vm3, %v1000_v2, 0.0 }
 0x242   :  { %1003 = vadd.xlane.f32.xlu2 %v1002_v3 }
 0x263   :  { %v974_v5 = vpop.xlane.xlu2 %973 }
 0x264   :  { %v975_v8 = vrot.slane %v974_v5, 4 }
 0x266   :  { %v976_v9 = vadd.f32 %v975_v8, %v974_v5 }
 0x268   :  { %v977_v10 = vrot.slane %v976_v9, 2 }
 0x26a   :  { %v978_v11 = vadd.f32 %v977_v10, %v976_v9 }
 0x26c   :  { %v979_v12 = vrot.slane %v978_v11, 1 }
 0x26e   :  { %v980_v29 = vadd.f32 %v979_v12, %v978_v11 }
 0x270   :  { %1488 = vpush %v980_v29 }
 0x2a1   :  { %s1489_s7 = spop %1488 }
 0x2a2   :  { %v1012_v6 = vstv %s1489_s7 }
 0x2a3   :  { %1013 = vst [vmem:[#allocation6] sm:$0xff] %v1012_v6 }
 0x2a4   :  { %1048 = dma.vmem_to_hbm [thread:$0]  %s1044_s25, 128, %s1046_s28, [#allocation5]  }
 0x2b5   :  { %v1004_v13 = vpop.xlane.xlu2 %1003 }
 0x2b6   :  { %v1005_v14 = vrot.slane %v1004_v13, 4 }
 0x2b8   :  { %v1006_v15 = vadd.f32 %v1005_v14, %v1004_v13 }
 0x2ba   :  { %v1007_v16 = vrot.slane %v1006_v15, 2 }
 0x2bc   :  { %v1008_v17 = vadd.f32 %v1007_v16, %v1006_v15 }
 0x2be   :  { %v1009_v18 = vrot.slane %v1008_v17, 1 }
 0x2c0   :  { %v1010_v19 = vadd.f32 %v1009_v18, %v1008_v17 }
 0x2c2   :  { %1490 = vpush %v1010_v19 }
 0x2f3   :  { %s1491_s11 = spop %1490 }
 0x2f4   :  { %v1014_v20 = vstv %s1491_s11 }
 0x2f5   :  { %1015 = vst [vmem:[#allocation7] sm:$0xff] %v1014_v20 }
 0x2f6   :  { %1059 = dma.vmem_to_hbm [thread:$0]  %s1055_s8, 128, %s1057_s30, [#allocation8]  }
 0x2f7   :  { %1600 = dma.done.wait [#allocation3], 1024  }
 0x2f8   :  { %1601 = vsyncadd [#allocation3], 4294966272 }
 0x2f9   :  { %1602 = dma.done.wait [#allocation5], 256  }
 0x2fa   :  { %1603 = vsyncadd [#allocation5], 4294967040 }
 0x2fb   :  { %1604 = dma.done.wait [#allocation8], 128  }
 0x2fc   :  { %1605 = vsyncadd [#allocation8], 4294967168 }
 0x2fd   :  { %1076 = vsyncpa [#allocation3], 1 }
 0x2fe   :  { %1077 = vsyncpa [#allocation5], 1 }
 0x2ff   :  { %1078 = vsyncpa [#allocation8], 1 }

</bundles_post_ra>
